<compile_context>
chip_gen: v7x
topology: tpu7x:2x2x1
jax: 0.10.0
libtpu: 0.0.40
codegen_flags: <defaults>
</compile_context>

<pallas_src>
import jax
import jax.numpy as jnp
from jax import lax  # noqa: F401  (kept for users swapping einsum -> dot_general)
from jax.experimental import pallas as pl
from jax.experimental.pallas import tpu as pltpu


def _mlp_kernel(x_ref, w0_ref, b0_ref, w1_ref, b1_ref, w2_ref, b2_ref, o_ref):
    """One batch-tile (lane dim) of the full MLP forward, all layers fused."""
    mxu_dtype = w0_ref.dtype

    # x tile arrives native (T, D); cast on the VPU, contract over D with a
    # trans-B dot so the layer output lands directly in lane-dense (H0, T).
    x = x_ref[...].astype(mxu_dtype)                                  # (T, D)
    h = jnp.einsum("hd,td->ht", w0_ref[...], x,
                   preferred_element_type=jnp.float32)                # (H0, T) f32
    # Dropout(p=0.0) == identity; bias-add + tanh stay f32 (v5e-friendly).
    h = jnp.tanh(h + b0_ref[...])

    # Layer 1: Linear + Tanh
    h = jnp.dot(w1_ref[...], h.astype(mxu_dtype),
                preferred_element_type=jnp.float32)                   # (H1, T)
    h = jnp.tanh(h + b1_ref[...])

    # Output head: Linear -> 4
    out = jnp.dot(w2_ref[...], h.astype(mxu_dtype),
                  preferred_element_type=jnp.float32) + b2_ref[...]   # (O, T)
    o_ref[...] = out.astype(o_ref.dtype)


def _round_up(n, m):
    return ((n + m - 1) // m) * m


def mlp_shash_forward(x, params, *, batch_tile=None, use_bf16=True):
    """Run the fused MLP kernel.

    x:      (B, input_dim) float32
    params: dict with PyTorch-layout weights:
            w0 (H0, D), b0 (H0, 1), w1 (H1, H0), b1 (H1, 1), w2 (4, H1), b2 (4, 1)
    """
    B, D = x.shape
    H0 = params["w0"].shape[0]
    H1 = params["w1"].shape[0]
    O = params["w2"].shape[0]

    if batch_tile is None:
        b128 = _round_up(B, 128)
        if b128 <= 4096:
            # >=2 grid steps when B allows (both v7x TensorCores get work),
            # while still amortizing the per-step overhead.
            batch_tile = max(128, _round_up(pl.cdiv(b128, 2), 128))
        else:
            batch_tile = 2048

    num_tiles = pl.cdiv(B, batch_tile)
    B_pad = num_tiles * batch_tile

    mxu_dtype = jnp.bfloat16 if use_bf16 else jnp.float32

    # x stays f32 and in its native (B, D) layout; only zero-pad the batch
    # tail when needed.  Padded rows produce tanh(bias) in the kernel and are
    # sliced off below.
    x_in = x.astype(jnp.float32)
    if B_pad != B:
        x_in = jnp.pad(x_in, ((0, B_pad - B), (0, 0)))

    w0 = params["w0"].astype(mxu_dtype)
    w1 = params["w1"].astype(mxu_dtype)
    w2 = params["w2"].astype(mxu_dtype)
    # Biases stay f32 (elementwise path stays f32, v5e-friendly).
    b0 = params["b0"].astype(jnp.float32)
    b1 = params["b1"].astype(jnp.float32)
    b2 = params["b2"].astype(jnp.float32)

    # Weights/biases: full-array blocks with constant block index -> DMA'd once
    # and kept VMEM-resident across the whole grid.
    full = lambda arr: pl.BlockSpec(arr.shape, lambda i: (0, 0))

    itemsize = lambda a: a.size * a.dtype.itemsize
    cost = pl.CostEstimate(
        flops=2 * B_pad * (D * H0 + H0 * H1 + H1 * O),
        transcendentals=B_pad * (H0 + H1),
        bytes_accessed=(itemsize(x_in) + B_pad * O * 4
                        + itemsize(w0) + itemsize(w1) + itemsize(w2)
                        + itemsize(b0) + itemsize(b1) + itemsize(b2)),
    )

    outT = pl.pallas_call(
        _mlp_kernel,
        out_shape=jax.ShapeDtypeStruct((O, B_pad), jnp.float32),
        grid_spec=pl.GridSpec(
            grid=(num_tiles,),
            in_specs=[
                pl.BlockSpec((batch_tile, D), lambda i: (i, 0)),   # x, native layout
                full(w0), full(b0),                                # layer 0
                full(w1), full(b1),                                # layer 1
                full(w2), full(b2),                                # head
            ],
            out_specs=pl.BlockSpec((O, batch_tile), lambda i: (0, i)),
        ),
        compiler_params=pltpu.CompilerParams(
            dimension_semantics=("parallel",)),
        cost_estimate=cost,
    )(x_in, w0, b0, w1, b1, w2, b2)

    # Back to (B, 4), dropping any batch padding.
    return jnp.transpose(outT)[:B].astype(x.dtype)


def init_params(key, input_dim, hidden_units, out_dim=4):
    """PyTorch-Linear-style init (uniform +-1/sqrt(fan_in)), stored (out, in)."""
    dims = [input_dim] + list(hidden_units) + [out_dim]
    params = {}
    names = [("w0", "b0"), ("w1", "b1"), ("w2", "b2")]
    for (wn, bn), (fin, fout) in zip(names, zip(dims[:-1], dims[1:])):
        key, kw, kb = jax.random.split(key, 3)
        bound = 1.0 / jnp.sqrt(float(fin))
        params[wn] = jax.random.uniform(kw, (fout, fin), jnp.float32, -bound, bound)
        params[bn] = jax.random.uniform(kb, (fout, 1), jnp.float32, -bound, bound)
    return params


def mlp_shash_reference(x, params):
    """Pure-JAX f32 reference of the same forward pass (PyTorch layout)."""
    h = jnp.tanh(x @ params["w0"].T + params["b0"].T)
    h = jnp.tanh(h @ params["w1"].T + params["b1"].T)
    return h @ params["w2"].T + params["b2"].T


if __name__ == "__main__":
    # Shapes consistent with the module: input_dim=16, hidden_units=[32, 32],
    # output=4.  batch=200 exercises tail padding (pads to 256) and a 2-step
    # grid (128-lane tiles), so both TensorCores get work on v7x.
    key = jax.random.PRNGKey(0)
    k_x, k_p = jax.random.split(key)

    input_dim = 16
    hidden_units = [32, 32]
    batch = 200

    x = jax.random.normal(k_x, (batch, input_dim), jnp.float32)
    params = init_params(k_p, input_dim, hidden_units)
    ref = mlp_shash_reference(x, params)

    # Pure-f32 kernel path: must match the f32 reference tightly.
    out_f32 = jax.block_until_ready(mlp_shash_forward(x, params, use_bf16=False))
    assert out_f32.shape == (batch, 4)
    assert jnp.allclose(out_f32, ref, atol=1e-5, rtol=1e-5), "f32 mismatch vs reference"

    # bf16-MXU / f32-accumulate path (default): looser tolerance vs f32
    # reference (bf16 quantization of x/W/activations is a ~1e-2-level error
    # source, mitigated by tanh saturation; use use_bf16=False for exactness).
    out_bf16 = jax.block_until_ready(mlp_shash_forward(x, params))
    assert out_bf16.shape == (batch, 4)
    assert jnp.allclose(out_bf16, ref, atol=5e-2, rtol=5e-2), "bf16 mismatch vs reference"

    # TODO(synk): dropout with rate > 0.0 in training mode would need
    # pltpu.prng_seed + pltpu.prng_random_bits masking; omitted since the
    # module default rate is 0.0 (identity).
    print("KERNEL_OK")
</pallas_src>

<mosaic_0001>
module attributes {stable_mosaic.version = 11 : i64} {
  func.func @_mlp_kernel(%arg0: i32, %arg1: memref<128x16xf32, #tpu.memory_space<vmem>>, %arg2: memref<32x16xf32, #tpu.memory_space<vmem>>, %arg3: memref<32x1xf32, #tpu.memory_space<vmem>>, %arg4: memref<32x32xf32, #tpu.memory_space<vmem>>, %arg5: memref<32x1xf32, #tpu.memory_space<vmem>>, %arg6: memref<4x32xf32, #tpu.memory_space<vmem>>, %arg7: memref<4x1xf32, #tpu.memory_space<vmem>>, %arg8: memref<4x128xf32, #tpu.memory_space<vmem>>) attributes {dimension_semantics = [#tpu.dimension_semantics<parallel>], iteration_bounds = array<i64: 2>, scalar_prefetch = 0 : i64, scratch_operands = 0 : i64, tpu.core_type = #tpu.core_type<tc>, window_params = [{transform_indices = @transform_0, window_bounds = array<i64: 128, 16>}, {pipeline_mode = #tpu.pipeline_mode<synchronous>, transform_indices = @transform_1, window_bounds = array<i64: 32, 16>}, {pipeline_mode = #tpu.pipeline_mode<synchronous>, transform_indices = @transform_2, window_bounds = array<i64: 32, 1>}, {pipeline_mode = #tpu.pipeline_mode<synchronous>, transform_indices = @transform_3, window_bounds = array<i64: 32, 32>}, {pipeline_mode = #tpu.pipeline_mode<synchronous>, transform_indices = @transform_4, window_bounds = array<i64: 32, 1>}, {pipeline_mode = #tpu.pipeline_mode<synchronous>, transform_indices = @transform_5, window_bounds = array<i64: 4, 32>}, {pipeline_mode = #tpu.pipeline_mode<synchronous>, transform_indices = @transform_6, window_bounds = array<i64: 4, 1>}, {transform_indices = @transform_7, window_bounds = array<i64: 4, 128>}]} {
    %c0 = arith.constant 0 : index
    %c0_0 = arith.constant 0 : index
    %0 = vector.load %arg1[%c0, %c0_0] : memref<128x16xf32, #tpu.memory_space<vmem>>, vector<128x16xf32>
    %c0_1 = arith.constant 0 : index
    %c0_2 = arith.constant 0 : index
    %1 = vector.load %arg2[%c0_1, %c0_2] : memref<32x16xf32, #tpu.memory_space<vmem>>, vector<32x16xf32>
    "tpu.trace_start"() <{level = 10 : i32, message = "hd,td->ht"}> : () -> ()
    %cst = arith.constant dense<0.000000e+00> : vector<32x128xf32>
    %2 = tpu.matmul %1, %0, %cst {dimension_numbers = #tpu.dot_dimension_numbers<[1], [1], [0], [0], [0, 0, 1, 0], [], []>} : vector<32x16xf32>, vector<128x16xf32>, vector<32x128xf32> -> vector<32x128xf32>
    "tpu.trace_stop"() : () -> ()
    %c0_3 = arith.constant 0 : index
    %c0_4 = arith.constant 0 : index
    %3 = vector.load %arg3[%c0_3, %c0_4] : memref<32x1xf32, #tpu.memory_space<vmem>>, vector<32x1xf32>
    %4 = vector.broadcast %3 : vector<32x1xf32> to vector<32x128xf32>
    %5 = arith.addf %2, %4 : vector<32x128xf32>
    %6 = math.tanh %5 : vector<32x128xf32>
    %c0_5 = arith.constant 0 : index
    %c0_6 = arith.constant 0 : index
    %7 = vector.load %arg4[%c0_5, %c0_6] : memref<32x32xf32, #tpu.memory_space<vmem>>, vector<32x32xf32>
    %cst_7 = arith.constant dense<0.000000e+00> : vector<32x128xf32>
    %8 = tpu.matmul %7, %6, %cst_7 {dimension_numbers = #tpu.dot_dimension_numbers<[1], [0], [0], [1], [0, 0, 1, 1], [], []>} : vector<32x32xf32>, vector<32x128xf32>, vector<32x128xf32> -> vector<32x128xf32>
    %c0_8 = arith.constant 0 : index
    %c0_9 = arith.constant 0 : index
    %9 = vector.load %arg5[%c0_8, %c0_9] : memref<32x1xf32, #tpu.memory_space<vmem>>, vector<32x1xf32>
    %10 = vector.broadcast %9 : vector<32x1xf32> to vector<32x128xf32>
    %11 = arith.addf %8, %10 : vector<32x128xf32>
    %12 = math.tanh %11 : vector<32x128xf32>
    %c0_10 = arith.constant 0 : index
    %c0_11 = arith.constant 0 : index
    %13 = vector.load %arg6[%c0_10, %c0_11] : memref<4x32xf32, #tpu.memory_space<vmem>>, vector<4x32xf32>
    %cst_12 = arith.constant dense<0.000000e+00> : vector<4x128xf32>
    %14 = tpu.matmul %13, %12, %cst_12 {dimension_numbers = #tpu.dot_dimension_numbers<[1], [0], [0], [1], [0, 0, 1, 1], [], []>} : vector<4x32xf32>, vector<32x128xf32>, vector<4x128xf32> -> vector<4x128xf32>
    %c0_13 = arith.constant 0 : index
    %c0_14 = arith.constant 0 : index
    %15 = vector.load %arg7[%c0_13, %c0_14] : memref<4x1xf32, #tpu.memory_space<vmem>>, vector<4x1xf32>
    %16 = vector.broadcast %15 : vector<4x1xf32> to vector<4x128xf32>
    %17 = arith.addf %14, %16 : vector<4x128xf32>
    %c0_15 = arith.constant 0 : index
    %c0_16 = arith.constant 0 : index
    %18 = vector.load %arg8[%c0_15, %c0_16] : memref<4x128xf32, #tpu.memory_space<vmem>>, vector<4x128xf32>
    tpu.vector_store %arg8[%c0_15, %c0_16], %17 {strides = array<i32>} : memref<4x128xf32, #tpu.memory_space<vmem>>, vector<4x128xf32>,
    return
  }
  func.func @transform_0(%arg0: i32) -> (i32, i32) {
    %c0_i32 = arith.constant 0 : i32
    %c0_i32_0 = arith.constant 0 : i32
    return %arg0, %c0_i32 : i32, i32
  }
  func.func @transform_1(%arg0: i32) -> (i32, i32) {
    %c0_i32 = arith.constant 0 : i32
    %c0_i32_0 = arith.constant 0 : i32
    %c0_i32_1 = arith.constant 0 : i32
    return %c0_i32, %c0_i32_0 : i32, i32
  }
  func.func @transform_2(%arg0: i32) -> (i32, i32) {
    %c0_i32 = arith.constant 0 : i32
    %c0_i32_0 = arith.constant 0 : i32
    %c0_i32_1 = arith.constant 0 : i32
    return %c0_i32, %c0_i32_0 : i32, i32
  }
  func.func @transform_3(%arg0: i32) -> (i32, i32) {
    %c0_i32 = arith.constant 0 : i32
    %c0_i32_0 = arith.constant 0 : i32
    %c0_i32_1 = arith.constant 0 : i32
    return %c0_i32, %c0_i32_0 : i32, i32
  }
  func.func @transform_4(%arg0: i32) -> (i32, i32) {
    %c0_i32 = arith.constant 0 : i32
    %c0_i32_0 = arith.constant 0 : i32
    %c0_i32_1 = arith.constant 0 : i32
    return %c0_i32, %c0_i32_0 : i32, i32
  }
  func.func @transform_5(%arg0: i32) -> (i32, i32) {
    %c0_i32 = arith.constant 0 : i32
    %c0_i32_0 = arith.constant 0 : i32
    %c0_i32_1 = arith.constant 0 : i32
    return %c0_i32, %c0_i32_0 : i32, i32
  }
  func.func @transform_6(%arg0: i32) -> (i32, i32) {
    %c0_i32 = arith.constant 0 : i32
    %c0_i32_0 = arith.constant 0 : i32
    %c0_i32_1 = arith.constant 0 : i32
    return %c0_i32, %c0_i32_0 : i32, i32
  }
  func.func @transform_7(%arg0: i32) -> (i32, i32) {
    %c0_i32 = arith.constant 0 : i32
    %c0_i32_0 = arith.constant 0 : i32
    return %c0_i32, %arg0 : i32, i32
  }
}

</mosaic_0001>

<bundles_post_ra>
// kernel: tpu_custom_call.1
= control target key start
LH: loop header
LB: loop body
LE: loop exit
PB: predicated region body
PF: predicated region fallthrough
CT: control target
= control target key end

     0   :  { %12 = vsyncpa [#allocation3], 0  ;;  %s1339_s0 = inlined_call_operand.vmem [shape: f32[256,16], index: 0, kind: input, shape index: {}]   ;;  %s1340_s1 = inlined_call_operand.vmem [shape: f32[32,16], index: 1, kind: input, shape index: {}]   ;;  %s1341_s2 = inlined_call_operand.vmem [shape: f32[32,1], index: 2, kind: input, shape index: {}]   ;;  %s1342_s3 = inlined_call_operand.vmem [shape: f32[32,32], index: 3, kind: input, shape index: {}]   ;;  %s1343_s4 = inlined_call_operand.vmem [shape: f32[32,1], index: 4, kind: input, shape index: {}]   ;;  %s1344_s5 = inlined_call_operand.vmem [shape: f32[4,32], index: 5, kind: input, shape index: {}]   ;;  %s1345_s6 = inlined_call_operand.vmem [shape: f32[4,1], index: 6, kind: input, shape index: {}]   ;;  %s1346_s7 = inlined_call_operand.hbm [shape: f32[4,256], index: 7, kind: output, shape index: {}]  }
   0x1   :  { %14 = vsyncpa [#allocation3 + $0x1], 0  ;;  %s1121_s24 = smov 0   ;;  %s1123_s25 = smov 0  }
   0x2   :  { %s1125_s26 = smov 0   ;;  %s1127_s27 = smov 0  }
   0x3 LB: > { %s1142_s28 = sadd.s32 4294967295, %s1074_s27   ;;  %s757_s29 = sadd.s32 4294967294, %s1074_s27   ;;  %s1074_s27 = sphi %s1127_s27, %s1354_s27   ;;  %s1070_s26 = sphi %s1125_s26, %s1353_s26   ;;  %s1066_s25 = sphi %s1123_s25, %s1352_s25   ;;  %s1062_s24 = sphi %s1121_s24, %s1351_s24  }
   0x4   : > { %s1146_s30 = sadd.s32 1, %s1074_s27   ;;  %s179_s8 = sadd.s32 1, %s1070_s26 }
   0x5   : > { %s176_s9 = ssub.s32 %s1074_s27, %s1146_s30  ;;  %p189_p0 = scmp.ne.s32.totalorder %s1070_s26, %s1066_s25 }
   0x6   : > { %p177_p1 = scmp.eq.s32.totalorder %s176_s9, 0  ;;  %p190_p2 = scmp.eq.s32.totalorder %s1142_s28, 1 }
   0x7   : > { %p195_p3 = scmp.ne.s32.totalorder %s1066_s25, %s1062_s24  ;;  %p196_p4 = scmp.eq.s32.totalorder %s757_s29, 1 }
   0x8   : > { %s1157_s10 = scalar_select %p177_p1, %s1070_s26, %s179_s8  }
   0x9   : > { %p1159_p5 = por %p190_p2, %p189_p0  ;;  %p1163_p6 = por %p196_p4, %p195_p3 }
   0xa   : > { %p760_p7 = scmp.ge.s32.totalorder %s1074_s27, 1  ;;  %p241_p8 = scmp.lt.s32.totalorder %s1074_s27, 3 }
   0xc   : > { %p242_p9 = pnand %p760_p7, %p241_p8 }
   0xd   : > { %s762_s13 = sshll.u32 (!%p242_p9), %s1142_s28, 4  ;;  %vm323_vm0 = vcmask (!%p242_p9), 130048   ;;  %v295_v0 = vld [vmem:[%s1340_s1] sm:$0xff] (!%p242_p9)  ;;  %v1076_v1 = vmov (!%p242_p9), 0   ;;  %v301_v3 = vld [vmem:[%s1341_s2 + $0x10] sm:$0xff] (!%p242_p9)  ;;  %v300_v4 = vld [vmem:[%s1341_s2 + $0x8] sm:$0xff] (!%p242_p9) }
   0xe   : > { %245 = sbr.rel (%p242_p9) target bundleno = 790 (0x316), region = 48  ;;  %p274_p10 = scmp.lt.s32.totalorder (!%p242_p9), %s762_s13, 31  ;;  %858 = vmatprep.mubr.msk.f32.mxu0 (!%p242_p9), %vm323_vm0, %v295_v0  ;;  %994 = vset.pattern.permute.xlu0 (!%p242_p9), %v1076_v1  ;;  %v299_v2 = vld [vmem:[%s1341_s2] sm:$0xff] (!%p242_p9)  ;;  %v302_v5 = vld [vmem:[%s1341_s2 + $0x18] sm:$0xff] (!%p242_p9)  ;;  %vm1193_vm1 = vmpackc.low (!%p242_p9), %vm323_vm0, %vm323_vm0  ;;  %vm501_vm2 = vcmask (!%p242_p9), 261120   ;;  %v1077_v61 = vmov (!%p242_p9), 0.0|0.0  }
   0xf   : > { %305 = vperm.xlu0 (!%p242_p9), %994, %v299_v2   ;;  %995 = vset.pattern.permute.xlu1 (!%p242_p9), %v1076_v1  ;;  %v477_v7 = vld [vmem:[%s1343_s4] sm:$0xff] (!%p242_p9)  ;;  %v478_v13 = vld [vmem:[%s1343_s4 + $0x8] sm:$0xff] (!%p242_p9)  ;;  %v479_v15 = vld [vmem:[%s1343_s4 + $0x10] sm:$0xff] (!%p242_p9)  ;;  %vm1078_vm3 = vmmov (!%p242_p9), 0   ;;  %v1079_v62 = vmov (!%p242_p9), 0.0   ;;  %s270_s9 = sand.u32 (!%p242_p9), 1, %s1066_s25  }
  0x10   : > { %315 = vperm.xlu1 (!%p242_p9), %995, %v301_v3   ;;  %v480_v16 = vld [vmem:[%s1343_s4 + $0x18] sm:$0xff] (!%p242_p9)  ;;  %v604_v19 = vld [vmem:[%s1345_s6] sm:$0xf] (!%p242_p9)  ;;  %v296_v36 = vld [vmem:[%s1340_s1 + $0x8] sm:$0xff] (!%p242_p9)  ;;  %s761_s15 = sshll.u32 (!%p242_p9), %s270_s9, 2  ;;  %s685_s20 = scalar_lea.sflag (!%p242_p9), [#allocation3], %s270_s9 }
  0x11   : > { %v297_v37 = vld [vmem:[%s1340_s1 + $0x10] sm:$0xff] (!%p242_p9)  ;;  %v298_v38 = vld [vmem:[%s1340_s1 + $0x18] sm:$0xff] (!%p242_p9)  ;;  %v473_v39 = vld [vmem:[%s1342_s3] sm:$0xff] (!%p242_p9)  ;;  %s272_s16 = scalar_lea.vmem (!%p242_p9), [#allocation2], %s761_s15 }
  0x12   : > { %872 = vmatprep.mubr.msk.f32.mxu1 (!%p242_p9), %vm501_vm2, %v473_v39  ;;  %v474_v58 = vld [vmem:[%s1342_s3 + $0x8] sm:$0xff] (!%p242_p9)  ;;  %v475_v59 = vld [vmem:[%s1342_s3 + $0x10] sm:$0xff] (!%p242_p9)  ;;  %v476_v60 = vld [vmem:[%s1342_s3 + $0x18] sm:$0xff] (!%p242_p9) }
  0x13   : > { %310 = vperm.xlu0 (!%p242_p9), %994, %v300_v4  }
  0x14   : > { %320 = vperm.xlu1 (!%p242_p9), %995, %v302_v5  }
  0x15   : > { %s1356_s13 = smov (!%p274_p10, %s762_s13), 31 }
  0x16   : > { %s763_s29 = sshll.u32 %s1356_s13, 3  ;;  %s698_s13 = sshll.u32 %s272_s16, 4  ;;  %s1299_s13 = int_to_ptr.vmem [resolvable:$true] %s698_s13 }
  0x17   : > { %s1189_s14 = scalar_lea.vmem %s1339_s0, %s763_s29  ;;  %483 = vperm.xlu0 %994, %v477_v7   ;;  %s1012_s21 = scalar_lea.vmem %s1299_s13, 64 }
  0x18   : > { %v279_v8 = vld [vmem:[%s1189_s14] sm:$0xff]  ;;  %v280_v9 = vld [vmem:[%s1189_s14 + $0x8] sm:$0xff]  ;;  %v281_v10 = vld [vmem:[%s1189_s14 + $0x10] sm:$0xff]  ;;  %488 = vperm.xlu1 %995, %v478_v13   ;;  %p1013_p11 = scmp.ne.s32.totalorder %s1299_s13, %s1012_s21 }
  0x19   : > { %v889_v11 = vpack.c.bf16 %v280_v9, %v279_v8  ;;  %v282_v12 = vld [vmem:[%s1189_s14 + $0x18] sm:$0xff]  ;;  %v283_v17 = vld [vmem:[%s1189_s14 + $0x20] sm:$0xff]  ;;  %v284_v18 = vld [vmem:[%s1189_s14 + $0x28] sm:$0xff] }
  0x1a   : > { %v895_v14 = vpack.c.bf16 %v282_v12, %v281_v10  ;;  %v901_v20 = vpack.c.bf16 %v284_v18, %v283_v17  ;;  %v285_v21 = vld [vmem:[%s1189_s14 + $0x30] sm:$0xff]  ;;  %v286_v22 = vld [vmem:[%s1189_s14 + $0x38] sm:$0xff]  ;;  %v287_v24 = vld [vmem:[%s1189_s14 + $0x40] sm:$0xff]  ;;  %p1014_p12 = pnand %p1013_p11, %p1159_p5 }
  0x1b   : > { %891 = vmatprep.subr.msk.bf16.mxu0 %vm1193_vm1, %v889_v11  ;;  %493 = vperm.xlu0 %994, %v479_v15   ;;  %v907_v23 = vpack.c.bf16 %v286_v22, %v285_v21  ;;  %v288_v25 = vld [vmem:[%s1189_s14 + $0x48] sm:$0xff]  ;;  %v289_v27 = vld [vmem:[%s1189_s14 + $0x50] sm:$0xff]  ;;  %v290_v28 = vld [vmem:[%s1189_s14 + $0x58] sm:$0xff] }
  0x1c   : > { %894 = vmatpush3.bf16.xpose.msk.msra.mxu0 %vm1193_vm1, %v889_v11  ;;  %498 = vperm.xlu1 %995, %v480_v16   ;;  %v913_v26 = vpack.c.bf16 %v288_v25, %v287_v24  ;;  %v919_v29 = vpack.c.bf16 %v290_v28, %v289_v27  ;;  %v291_v30 = vld [vmem:[%s1189_s14 + $0x60] sm:$0xff]  ;;  %v292_v31 = vld [vmem:[%s1189_s14 + $0x68] sm:$0xff]  ;;  %v293_v33 = vld [vmem:[%s1189_s14 + $0x70] sm:$0xff]  ;;  %p1015_p13 = pneg %p1014_p12 }
  0x1d   : > { %897 = vmatprep.subr.msk.bf16.mxu0 %vm1193_vm1, %v895_v14  ;;  %v925_v32 = vpack.c.bf16 %v292_v31, %v291_v30  ;;  %v294_v34 = vld [vmem:[%s1189_s14 + $0x78] sm:$0xff]  ;;  %v603_v17 = vld [vmem:[%s1344_s5] sm:$0xf]  ;;  %s790_s14 = sshll.u32 %s1142_s28, 6  ;;  %s1080_s28 = smov [#allocation2]  }
  0x1e   : > { %v931_v35 = vpack.c.bf16 %v294_v34, %v293_v33  ;;  %s1297_s19 = scalar_lea.hbm %s1346_s7, %s790_s14  ;;  %s1016_s22 = sshll.u32 %s1080_s28, 4  ;;  %s1017_s22 = int_to_ptr.vmem [resolvable:$false] %s1016_s22 }
  0x1f   : > { %607 = vperm.xlu0 %994, %v604_v19   ;;  %s1018_s23 = scalar_lea.vmem %s1017_s22, 128  ;;  %p1019_p0 = scmp.lt.s32.totalorder %s1299_s13, %s1017_s22 }
  0x20   : > { %p1020_p1 = scmp.lt.s32.totalorder %s1018_s23, %s1012_s21 }
  0x22   : > { %p1021_p2 = por %p1020_p1, %p1019_p0 }
  0x24   : > { %900 = vmatpush3.bf16.xpose.msk.msra.mxu0 %vm1193_vm1, %v895_v14  ;;  %p1022_p3 = pnand %p1021_p2, %p1015_p13 }
  0x25   : > { %903 = vmatprep.subr.msk.bf16.mxu0 %vm1193_vm1, %v901_v20 }
  0x2c   : > { %906 = vmatpush3.bf16.xpose.msk.msra.mxu0 %vm1193_vm1, %v901_v20 }
  0x2d   : > { %909 = vmatprep.subr.msk.bf16.mxu0 %vm1193_vm1, %v907_v23 }
  0x34   : > { %912 = vmatpush3.bf16.xpose.msk.msra.mxu0 %vm1193_vm1, %v907_v23 }
  0x35   : > { %915 = vmatprep.subr.msk.bf16.mxu0 %vm1193_vm1, %v913_v26 }
  0x3c   : > { %918 = vmatpush3.bf16.xpose.msk.msra.mxu0 %vm1193_vm1, %v913_v26 }
  0x3d   : > { %921 = vmatprep.subr.msk.bf16.mxu0 %vm1193_vm1, %v919_v29 }
  0x44   : > { %924 = vmatpush3.bf16.xpose.msk.msra.mxu0 %vm1193_vm1, %v919_v29 }
  0x45   : > { %927 = vmatprep.subr.msk.bf16.mxu0 %vm1193_vm1, %v925_v32 }
  0x4c   : > { %930 = vmatpush3.bf16.xpose.msk.msra.mxu0 %vm1193_vm1, %v925_v32 }
  0x4d   : > { %933 = vmatprep.subr.msk.bf16.mxu0 %vm1193_vm1, %v931_v35 }
  0x54   : > { %936 = vmatpush3.bf16.xpose.msk.msra.mxu0 %vm1193_vm1, %v931_v35 }
  0x5b   : > { %859 = vmatmul.mubr.msk.f32.vlgmr.msra.gmra.mrb[0].mxu0 %vm323_vm0, %v296_v36 }
  0x5c   : > { %861 = vmatprep.mubr.msk.f32.mxu0 %vm323_vm0, %v297_v37 }
  0x5f   : > { %862 = vmatmul.mubr.msk.f32.gmra.mrb[2].mxu0 %vm323_vm0, %v298_v38 }
  0x8e   : > { %v306_v40 = vpop.permute.xlu0 %305 }
  0x8f   : > { %v316_v41 = vpop.permute.xlu1 %315 }
  0x92   : > { %v311_v42 = vpop.permute.xlu0 %310 }
  0x93   : > { %v321_v47 = vpop.permute.xlu1 %320 }
  0x96   : > { %v484_v0 = vpop.permute.xlu0 %483 }
  0x97   : > { %v489_v63 = vpop.permute.xlu1 %488 }
  0x9a   : > { %v494_v7 = vpop.permute.xlu0 %493 }
  0x9b   : > { %v499_v5 = vpop.permute.xlu1 %498 }
  0x9e   : > { %v608_v18 = vpop.permute.xlu0 %607 }
 0x12e   : > { %v860_v43 = vpop.f32.mrb[0].mxu0 }
 0x12f   : > { %v456_v44 = vadd.f32 %v860_v43, %v311_v42  ;;  %v450_v45 = vpop.f32.mrb[1].mxu0 }
 0x130   : > { %v451_v46 = vadd.f32 %v450_v45, %v306_v40 }
 0x131   : > { %996 = vtanh.f32 %v456_v44 }
 0x132   : > { %998 = vtanh.f32 %v451_v46  ;;  %v863_v48 = vpop.f32.mrb[2].mxu0 }
 0x133   : > { %v466_v49 = vadd.f32 %v863_v48, %v321_v47  ;;  %v460_v50 = vpop.f32.mrb[3].mxu0 }
 0x134   : > { %v461_v51 = vadd.f32 %v460_v50, %v316_v41 }
 0x135   : > { %1000 = vtanh.f32 %v466_v49 }
 0x136   : > { %1002 = vtanh.f32 %v461_v51 }
 0x13b   : > { %v997_v52 = vpop.eup %996 }
 0x13c   : > { %v999_v53 = vpop.eup %998 }
 0x13d   : > { %v937_v54 = vpack.c.bf16 %v997_v52, %v999_v53 }
 0x13f   : > { %v1001_v55 = vpop.eup %1000  ;;  %938 = vmatprep.subr.bf16.mxu1 %v937_v54 }
 0x140   : > { %v1003_v56 = vpop.eup %1002  ;;  %940 = vmatpush3.bf16.msra.mxu1 %v937_v54 }
 0x141   : > { %v941_v57 = vpack.c.bf16 %v1001_v55, %v1003_v56 }
 0x143   : > { %942 = vmatprep.subr.bf16.mxu1 %v941_v57 }
 0x144   : > { %944 = vmatpush3.bf16.msra.mxu1 %v941_v57 }
 0x145   : > { %945 = vmatprep.subr.bf16.mxu1 %v1077_v61 }
 0x147   : > { %873 = vmatmul.mubr.msk.f32.vlgmr.msra.gmra.mrb[0].mxu1 %vm501_vm2, %v474_v58 }
 0x148   : > { %875 = vmatprep.mubr.msk.f32.mxu1 %vm501_vm2, %v475_v59 }
 0x14b   : > { %876 = vmatmul.mubr.msk.f32.gmra.mrb[2].mxu1 %vm501_vm2, %v476_v60 }
 0x14c   : > { %886 = vmatprep.mubr.msk.f32.mxu1 %vm1078_vm3, %v1079_v62 }
 0x21a   : > { %v874_v1 = vpop.f32.mrb[0].mxu1 }
 0x21b   : > { %v586_v2 = vadd.f32 %v874_v1, %v489_v63  ;;  %v580_v3 = vpop.f32.mrb[1].mxu1 }
 0x21c   : > { %v581_v4 = vadd.f32 %v580_v3, %v484_v0 }
 0x21d   : > { %1004 = vtanh.f32 %v586_v2 }
 0x21e   : > { %1006 = vtanh.f32 %v581_v4  ;;  %v877_v6 = vpop.f32.mrb[2].mxu1 }
 0x21f   : > { %v596_v8 = vadd.f32 %v877_v6, %v499_v5  ;;  %v590_v9 = vpop.f32.mrb[3].mxu1 }
 0x220   : > { %v591_v10 = vadd.f32 %v590_v9, %v494_v7 }
 0x221   : > { %1008 = vtanh.f32 %v596_v8 }
 0x222   : > { %1010 = vtanh.f32 %v591_v10 }
 0x227   : > { %v1005_v11 = vpop.eup %1004 }
 0x228   : > { %v1007_v12 = vpop.eup %1006 }
 0x229   : > { %v946_v13 = vpack.c.bf16 %v1005_v11, %v1007_v12 }
 0x22b   : > { %v1009_v14 = vpop.eup %1008  ;;  %947 = vmatpush3.bf16.msra.mxu1 %v946_v13 }
 0x22c   : > { %v1011_v15 = vpop.eup %1010  ;;  %948 = vmatprep.subr.bf16.mxu1 %v1077_v61 }
 0x22d   : > { %v949_v16 = vpack.c.bf16 %v1009_v14, %v1011_v15 }
 0x22f   : > { %950 = vmatpush3.bf16.msra.mxu1 %v949_v16 }
 0x232   : > { %887 = vmatmul.mubr.msk.f32.vlgmr.msra.gmra.mrb[4].mxu1 %vm501_vm2, %v603_v17 }
 0x305   : > { %v679_v19 = vpop.f32.mrb[4].mxu1 }
 0x306   : > { %v680_v20 = vadd.f32 %v679_v19, %v608_v18  ;;  %v888_v21 = vpop.f32.mrb[5].mxu1 }
 0x308   : > { %683 = vst [vmem:[%s272_s16] sm:$0xf] %v680_v20 }
 0x309   : > { %1025 = shalt.err (!%p1022_p3)
}
 0x30a   : > { %s1026_s29 = scalar_lea.hbm %s1297_s19, 64  ;;  %s1030_s15 = scalar_lea.hbm %s1346_s7, 128 }
 0x30b   : > { %p1027_p4 = scmp.ne.s32.totalorder %s1297_s19, %s1026_s29  ;;  %p1031_p9 = scmp.lt.u32.totalorder %s1297_s19, %s1346_s7 }
 0x30c   : > { %p1032_p10 = scmp.lt.u32.totalorder %s1030_s15, %s1026_s29  ;;  %p1034_p12 = scmp.lt.u32.totalorder %s1026_s29, %s1297_s19 }
 0x30d   : > { %p1028_p7 = pnand %p1027_p4, %p1159_p5 }
 0x30e   : > { %p1033_p11 = por %p1032_p10, %p1031_p9 }
 0x30f   : > { %p1029_p8 = pneg %p1028_p7 }
 0x310   : > { %p1035_p13 = por %p1034_p12, %p1033_p11 }
 0x312   : > { %p1036_p0 = pnand %p1035_p13, %p1029_p8 }
 0x314   : > { %1039 = shalt.err (!%p1036_p0)
}
 0x315   : > { %951 = dma.vmem_to_hbm [thread:$0]  (%p1159_p5), %s1299_s13, 64, %s1297_s19, %s685_s20  }
 0x316 PF: > { %p957_p1 = scmp.ge.s32.totalorder %s1074_s27, 2  ;;  %s710_s17 = sand.u32 1, %s1062_s24  }
 0x317   : > { %s711_s18 = scalar_lea.sflag [#allocation3], %s710_s17 }
 0x318   : > { %p954_p2 = pnand %p957_p1, %p1163_p6 }
 0x31a   : > { %1057 = dma.done.wait (!%p954_p2), %s711_s18, 64  }
 0x31b   : > { %1059 = vsyncadd (!%p954_p2), %s711_s18, 4294967232  ;;  %p17_p3 = scmp.ge.s32.totalorder %s1146_s30, 4   ;;  %s1351_s24 = smov %s1066_s25 }
 0x31c   : > { %s1352_s25 = smov %s1070_s26  ;;  %s1353_s26 = smov %s1157_s10 }
 0x31d   : > { %s1354_s27 = smov %s1146_s30  ;;  %19 = sbr.rel (!%p17_p3) target bundleno = 3 (0x3), region = 83 }
 0x324   :  { %716 = vsyncpa [#allocation3], 1 }
 0x325   :  { %718 = vsyncpa [#allocation3 + $0x1], 1 }

</bundles_post_ra>
